<compile_context>
chip_gen: v5e
topology: v5e:2x2
jax: 0.10.0
libtpu: 0.0.40
codegen_flags: <defaults>
</compile_context>

<pallas_src>
import functools

import numpy as np
import jax
import jax.numpy as jnp
from jax.experimental import pallas as pl
from jax.experimental.pallas import tpu as pltpu


class Config:
    IMAGE_RESOLUTION = 16
    NUM_SDFS = 2
    INTENSITIES = np.array([0.3, 0.5], dtype=np.float64)
    THETA_MAX = 90.0


def _renderer_kernel(sdf_ref, inten_ref, projT_ref, out_ref, *, num_sdfs, resolution):
    # sdf_ref  : VMEM (C, T, R*R) f32   signed-distance values, image plane on lanes
    # inten_ref: SMEM (C,)        f32   per-sdf intensity scalars
    # projT_ref: VMEM (R*R, T*R)  bf16  packed rotation+row-sum operator,
    #                                   projT[k, t*R+i] = proj[t, i, k]
    # out_ref  : VMEM (T, T*R)    f32   raw matmul result (lane-dense store);
    #                                   diagonal blocks extracted in the wrapper

    # sdf_to_occ: clamp(50 * (sigmoid(x) - 0.5), 0, 1) per channel, then weighted sum.
    def occ(c):
        return jnp.clip(50.0 * (jax.nn.sigmoid(sdf_ref[c]) - 0.5), 0.0, 1.0)  # (T, R*R)

    canvas = occ(0) * inten_ref[0]
    for c in range(1, num_sdfs):  # C is tiny & static
        canvas = canvas + occ(c) * inten_ref[c]

    # (T, R*R) x (R*R, T*R) on the MXU, f32 accumulation; /R folds the mean over columns.
    res = jnp.dot(
        canvas.astype(projT_ref.dtype),
        projT_ref[...],
        preferred_element_type=jnp.float32,
    )
    out_ref[...] = res * (1.0 / resolution)


def renderer_forward(sdf_volumes, intensities, proj_ops, resolution, num_sdfs):
    # sdf_volumes: (T, C, R, R) f32, proj_ops: (T, R, R, R) f32, intensities: (C,) f32
    t = sdf_volumes.shape[0]
    rr = resolution * resolution

    # Wrapper-side reshapes/transposes are layout plumbing (handled by XLA, tiny here).
    sdf_flat = jnp.transpose(sdf_volumes, (1, 0, 2, 3)).reshape(num_sdfs, t, rr)
    # projT[k, t*R + i] = proj[t, i, k]; bf16 halves the dominant DMA, f32 accumulate
    # stays inside the MXU.
    projT = (
        jnp.transpose(proj_ops.reshape(t, resolution, rr), (2, 0, 1))
        .reshape(rr, t * resolution)
        .astype(jnp.bfloat16)
    )

    proj_bytes = projT.size * projT.dtype.itemsize
    # TODO(synk): beyond ~16 MiB the dense operator risks v7x's 32 MiB scoped / 64 MiB
    # physical VMEM (~2x sooner than v5e/v6e's 128 MiB); switch to the scalar-prefetch
    # 4-tap sparse form or a K-chunked grid axis with a VMEM f32 accumulator (K tiles a
    # multiple of 128 on v5e, 256 on v6e/v7x) before that point.
    assert proj_bytes <= 16 * 1024 * 1024, (
        f"dense projection operator ({proj_bytes} B) too large for single-shot VMEM"
    )

    kernel = functools.partial(
        _renderer_kernel, num_sdfs=num_sdfs, resolution=resolution
    )
    res = pl.pallas_call(
        kernel,
        out_shape=jax.ShapeDtypeStruct((t, t * resolution), jnp.float32),
        in_specs=[
            pl.BlockSpec(memory_space=pltpu.MemorySpace.VMEM),
            pl.BlockSpec(memory_space=pltpu.MemorySpace.SMEM),
            pl.BlockSpec(memory_space=pltpu.MemorySpace.VMEM),
        ],
        out_specs=pl.BlockSpec(memory_space=pltpu.MemorySpace.VMEM),
    )(sdf_flat, intensities, projT)

    # Extract the diagonal blocks res[t, t*R:(t+1)*R] and return (R, T) like torch
    # `intensity` (cheap XLA gather on a 4 KiB array).
    res3 = res.reshape(t, t, resolution)  # [theta of canvas, theta of operator, row]
    return jnp.diagonal(res3, axis1=0, axis2=1)  # (R, T)


def rotation_rowsum_operator(theta_deg, resolution):
    """Per-theta linear operator: (rotate canvas by theta about the image center with
    bilinear interpolation + zero padding, then sum over columns).

    kornia.get_rotation_matrix2d(center, t, 1) builds the OpenCV rotation matrix M(t);
    kornia.warp_affine samples the source at M(t)^-1 @ dst = M(-t) @ dst.
    """
    r = resolution
    a = -jnp.deg2rad(theta_deg)
    ca, sa = jnp.cos(a), jnp.sin(a)
    cx = cy = r / 2.0  # center passed explicitly by the PyTorch Renderer
    ii, jj = jnp.meshgrid(
        jnp.arange(r, dtype=jnp.float32),
        jnp.arange(r, dtype=jnp.float32),
        indexing="ij",
    )
    xs = ca * jj + sa * ii + (1.0 - ca) * cx - sa * cy
    ys = -sa * jj + ca * ii + sa * cx + (1.0 - ca) * cy
    x0f = jnp.floor(xs)
    y0f = jnp.floor(ys)
    fx = xs - x0f
    fy = ys - y0f
    x0 = x0f.astype(jnp.int32)
    y0 = y0f.astype(jnp.int32)
    w_full = jnp.zeros((r, r, r, r), jnp.float32)  # [dst_row, dst_col, src_row, src_col]
    for dy in (0, 1):
        for dx in (0, 1):
            py = y0 + dy
            px = x0 + dx
            w = (fy if dy else 1.0 - fy) * (fx if dx else 1.0 - fx)
            oh_p = jax.nn.one_hot(py, r, dtype=jnp.float32)  # zeros if out of range
            oh_q = jax.nn.one_hot(px, r, dtype=jnp.float32)  # (== zero padding)
            w_full = w_full + w[:, :, None, None] * oh_p[:, :, :, None] * oh_q[:, :, None, :]
    # fold torch.sum(canvas, axis=1) over destination columns into the operator
    return jnp.sum(w_full, axis=1)  # (R, R, R) = [dst_row, src_row, src_col]


if __name__ == "__main__":
    config = Config()
    R = config.IMAGE_RESOLUTION
    C = config.NUM_SDFS
    offset = 0.0
    bandwidth = 0.05

    all_thetas = np.linspace(-45.0, 45.0, 8).astype(float)  # 1D float array, |t| <= THETA_MAX
    T = all_thetas.shape[0]

    key = jax.random.PRNGKey(0)
    # Synthetic SDF: the reference SDF.forward raises NotImplementedError, so substitute
    # deterministic per-view signed-distance volumes of shape (R, R, C) per theta.
    sdf_hwc = jax.random.normal(key, (T, R, R, C), dtype=jnp.float32)
    sdf_volumes = jnp.transpose(sdf_hwc, (0, 3, 1, 2))  # (T, C, R, R)

    # Intensities.forward() with learnable=False:
    #   residual = clamp(0 * INTENSITIES, -1, 1) * bandwidth;  return INTENSITIES + residual
    default = jnp.asarray(config.INTENSITIES, dtype=jnp.float32)
    inty = 0.0 * default
    intensities = default + jnp.clip(inty, -1.0, 1.0) * bandwidth  # (C,)

    thetas_eff = jnp.asarray(all_thetas, dtype=jnp.float32) + offset
    proj_ops = jax.vmap(lambda t: rotation_rowsum_operator(t, R))(thetas_eff)  # (T,R,R,R)

    out = renderer_forward(sdf_volumes, intensities, proj_ops, R, C)
    out = jax.block_until_ready(out)
    assert out.shape == (R, T), out.shape

    # plain-JAX f32 reference for a sanity check of the kernel (kernel uses bf16
    # MXU operands with f32 accumulation; error << tolerance at these magnitudes)
    occ_ref = jnp.clip(50.0 * (jax.nn.sigmoid(sdf_volumes) - 0.5), 0.0, 1.0)
    canvas_ref = jnp.einsum("tcpq,c->tpq", occ_ref, intensities)
    ref = (jnp.einsum("tipq,tpq->ti", proj_ops, canvas_ref) / R).T
    assert jnp.allclose(out, ref, rtol=1e-2, atol=1e-2), "kernel/reference mismatch"

    print("KERNEL_OK")
</pallas_src>

<mosaic_0001>
module attributes {stable_mosaic.version = 11 : i64} {
  func.func @_renderer_kernel(%arg0: memref<2x8x256xf32, #tpu.memory_space<vmem>>, %arg1: memref<2xf32, #tpu.memory_space<smem>>, %arg2: memref<256x128xbf16, #tpu.memory_space<vmem>>, %arg3: memref<8x128xf32, #tpu.memory_space<vmem>>) attributes {dimension_semantics = [], scalar_prefetch = 0 : i64, scratch_operands = 0 : i64, tpu.core_type = #tpu.core_type<tc>} {
    %c0 = arith.constant 0 : index
    %c0_0 = arith.constant 0 : index
    %c0_1 = arith.constant 0 : index
    %0 = vector.load %arg0[%c0, %c0_0, %c0_1] : memref<2x8x256xf32, #tpu.memory_space<vmem>>, vector<1x8x256xf32>
    %1 = vector.shape_cast %0 : vector<1x8x256xf32> to vector<8x256xf32>
    %2 = arith.negf %1 : vector<8x256xf32>
    %3 = math.exp %2 : vector<8x256xf32>
    %cst = arith.constant 1.000000e+00 : f32
    %4 = vector.broadcast %cst : f32 to vector<8x256xf32>
    %5 = arith.addf %4, %3 : vector<8x256xf32>
    %6 = arith.divf %4, %5 : vector<8x256xf32>
    %cst_2 = arith.constant 5.000000e-01 : f32
    %7 = vector.broadcast %cst_2 : f32 to vector<8x256xf32>
    %8 = arith.subf %6, %7 : vector<8x256xf32>
    %cst_3 = arith.constant 5.000000e+01 : f32
    %9 = vector.broadcast %cst_3 : f32 to vector<8x256xf32>
    %10 = arith.mulf %9, %8 : vector<8x256xf32>
    %cst_4 = arith.constant 0.000000e+00 : f32
    %cst_5 = arith.constant 1.000000e+00 : f32
    %11 = vector.broadcast %cst_4 : f32 to vector<8x256xf32>
    %12 = arith.maximumf %11, %10 : vector<8x256xf32>
    %13 = vector.broadcast %cst_5 : f32 to vector<8x256xf32>
    %14 = arith.minimumf %13, %12 : vector<8x256xf32>
    %c0_6 = arith.constant 0 : index
    %15 = memref.load %arg1[%c0_6] : memref<2xf32, #tpu.memory_space<smem>>
    %16 = vector.broadcast %15 : f32 to vector<8x256xf32>
    %17 = arith.mulf %14, %16 : vector<8x256xf32>
    %c1 = arith.constant 1 : index
    %c0_7 = arith.constant 0 : index
    %c0_8 = arith.constant 0 : index
    %18 = vector.load %arg0[%c1, %c0_7, %c0_8] : memref<2x8x256xf32, #tpu.memory_space<vmem>>, vector<1x8x256xf32>
    %19 = vector.shape_cast %18 : vector<1x8x256xf32> to vector<8x256xf32>
    %20 = arith.negf %19 : vector<8x256xf32>
    %21 = math.exp %20 : vector<8x256xf32>
    %cst_9 = arith.constant 1.000000e+00 : f32
    %22 = vector.broadcast %cst_9 : f32 to vector<8x256xf32>
    %23 = arith.addf %22, %21 : vector<8x256xf32>
    %24 = arith.divf %22, %23 : vector<8x256xf32>
    %cst_10 = arith.constant 5.000000e-01 : f32
    %25 = vector.broadcast %cst_10 : f32 to vector<8x256xf32>
    %26 = arith.subf %24, %25 : vector<8x256xf32>
    %cst_11 = arith.constant 5.000000e+01 : f32
    %27 = vector.broadcast %cst_11 : f32 to vector<8x256xf32>
    %28 = arith.mulf %27, %26 : vector<8x256xf32>
    %cst_12 = arith.constant 0.000000e+00 : f32
    %cst_13 = arith.constant 1.000000e+00 : f32
    %29 = vector.broadcast %cst_12 : f32 to vector<8x256xf32>
    %30 = arith.maximumf %29, %28 : vector<8x256xf32>
    %31 = vector.broadcast %cst_13 : f32 to vector<8x256xf32>
    %32 = arith.minimumf %31, %30 : vector<8x256xf32>
    %c1_14 = arith.constant 1 : index
    %33 = memref.load %arg1[%c1_14] : memref<2xf32, #tpu.memory_space<smem>>
    %34 = vector.broadcast %33 : f32 to vector<8x256xf32>
    %35 = arith.mulf %32, %34 : vector<8x256xf32>
    %36 = arith.addf %17, %35 : vector<8x256xf32>
    %37 = arith.truncf %36 : vector<8x256xf32> to vector<8x256xbf16>
    %c0_15 = arith.constant 0 : index
    %c0_16 = arith.constant 0 : index
    %38 = vector.load %arg2[%c0_15, %c0_16] : memref<256x128xbf16, #tpu.memory_space<vmem>>, vector<256x128xbf16>
    %cst_17 = arith.constant dense<0.000000e+00> : vector<8x128xf32>
    %39 = tpu.matmul %37, %38, %cst_17 {dimension_numbers = #tpu.dot_dimension_numbers<[1], [0], [0], [1], [0, 0, 1, 1], [], []>} : vector<8x256xbf16>, vector<256x128xbf16>, vector<8x128xf32> -> vector<8x128xf32>
    %cst_18 = arith.constant 6.250000e-02 : f32
    %40 = vector.broadcast %cst_18 : f32 to vector<8x128xf32>
    %41 = arith.mulf %39, %40 : vector<8x128xf32>
    %c0_19 = arith.constant 0 : index
    %c0_20 = arith.constant 0 : index
    %42 = vector.load %arg3[%c0_19, %c0_20] : memref<8x128xf32, #tpu.memory_space<vmem>>, vector<8x128xf32>
    tpu.vector_store %arg3[%c0_19, %c0_20], %41 {strides = array<i32>} : memref<8x128xf32, #tpu.memory_space<vmem>>, vector<8x128xf32>,
    return
  }
}

</mosaic_0001>

<bundles_post_ra>
// kernel: tpu_custom_call.1
= control target key start
LH: loop header
LB: loop body
LE: loop exit
PB: predicated region body
PF: predicated region fallthrough
CT: control target
= control target key end

     0   :  { %8 = vsyncpa [#allocation3], 0  ;;  %s638_s0 = inlined_call_operand.hbm [shape: f32[2,8,256], index: 0, kind: input, shape index: {}]   ;;  %s639_s1 = inlined_call_operand.hbm [shape: f32[2], index: 1, kind: input, shape index: {}]   ;;  %s640_s2 = inlined_call_operand.hbm [shape: bf16[256,128], index: 2, kind: input, shape index: {}]   ;;  %s641_s3 = inlined_call_operand.hbm [shape: f32[8,128], index: 3, kind: output, shape index: {}]  }
   0x1   :  { %9 = vsyncpa [#allocation5], 0 }
   0x2   :  { %10 = vsyncpa [#allocation8], 0 }
   0x3   :  { %11 = vsyncpa [#allocation4], 0  ;;  %s16_s14 = sshll.u32 %s638_s0, 4  ;;  %s549_s15 = smov [#allocation2]   ;;  %s17_s14 = int_to_ptr.hbm [resolvable:$true] %s16_s14 }
   0x4   :  { %s18_s16 = sshll.u32 %s549_s15, 4  ;;  %s30_s19 = sshll.u32 %s639_s1, 4  ;;  %s19_s16 = int_to_ptr.vmem [resolvable:$true] %s18_s16  ;;  %s31_s19 = int_to_ptr.hbm [resolvable:$true] %s30_s19 }
   0x5   :  { %s550_s20 = smov 256   ;;  %s551_s21 = smov 16  }
   0x6   :  { %24 = dma.hbm_to_vmem [thread:$0]  %s17_s14, 512, %s19_s16, [#allocation3], %s550_s20, %s550_s20, %s551_s21  }
   0x7   :  { %s552_s22 = smov [#allocation6]   ;;  %s38_s25 = sshll.u32 %s640_s2, 4  ;;  %s39_s25 = int_to_ptr.hbm [resolvable:$true] %s38_s25 }
   0x8   :  { %33 = dma.hbm_to_smem %s31_s19, 16, %s552_s22, [#allocation5]  }
   0x9   :  { %s553_s0 = smov [#allocation7]   ;;  %s554_s27 = smov 64  }
   0xa   :  { %s40_s26 = sshll.u32 %s553_s0, 4  ;;  %s555_s28 = smov 4   ;;  %s41_s26 = int_to_ptr.vmem [resolvable:$true] %s40_s26 }
   0xb   :  { %46 = dma.hbm_to_vmem [thread:$0]  %s39_s25, 2048, %s41_s26, [#allocation8], %s554_s27, %s554_s27, %s555_s28  }
   0xc   :  { %541 = dma.done.wait [#allocation3], 512  }
   0xd   :  { %542 = vsyncadd [#allocation3], 4294966784 }
   0xe   :  { %543 = dma.done.wait [#allocation5], 16  }
   0xf   :  { %544 = vsyncadd [#allocation5], 4294967280 }
  0x10   :  { %545 = dma.done.wait [#allocation8], 2048  }
  0x11   :  { %546 = vsyncadd [#allocation8], 4294965248 }
  0x12   :  { %59 = sfence }
  0x13   :  { %v424_v0 = vld [vmem:[#allocation7 + $0x38] sm:$0xff]  ;;  %v423_v2 = vld [vmem:[#allocation7 + $0x30] sm:$0xff]  ;;  %v422_v4 = vld [vmem:[#allocation7 + $0x28] sm:$0xff]  ;;  %s611_s1 = sld [smem:[#allocation6]]  ;;  %s556_s29 = smov [#allocation9]  }
  0x14   :  { %v432_v1 = vld [vmem:[#allocation7 + $0x78] sm:$0xff]  ;;  %297 = vmatpush.bf16.msra.mxu0 %v424_v0  ;;  %v431_v3 = vld [vmem:[#allocation7 + $0x70] sm:$0xff]  ;;  %v430_v5 = vld [vmem:[#allocation7 + $0x68] sm:$0xff]  ;;  %s616_s2 = sld [smem:[#allocation6 + $0x1]]  ;;  %s330_s30 = sshll.u32 %s556_s29, 4  ;;  %s331_s30 = int_to_ptr.vmem [resolvable:$true] %s330_s30 }
  0x15   :  { %310 = vmatpush.bf16.msra.mxu1 %v432_v1  ;;  %v60_v6 = vld [vmem:[#allocation2] sm:$0xff]  ;;  %v113_v7 = vld [vmem:[#allocation2 + $0x10] sm:$0xff]  ;;  %v61_v10 = vld [vmem:[#allocation2 + $0x8] sm:$0xff]  ;;  %s332_s6 = sshll.u32 %s641_s3, 4  ;;  %s333_s6 = int_to_ptr.hbm [resolvable:$true] %s332_s6 }
  0x16   :  { %v344_v8 = vmul.f32 -1.442695, %v60_v6  ;;  %v348_v9 = vmul.f32 -1.442695, %v113_v7  ;;  %v114_v11 = vld [vmem:[#allocation2 + $0x18] sm:$0xff]  ;;  %v421_v14 = vld [vmem:[#allocation7 + $0x20] sm:$0xff] }
  0x17   :  { %v345_v12 = vmul.f32 -1.442695, %v61_v10  ;;  %v349_v13 = vmul.f32 -1.442695, %v114_v11  ;;  %v429_v15 = vld [vmem:[#allocation7 + $0x60] sm:$0xff]  ;;  %v420_v17 = vld [vmem:[#allocation7 + $0x18] sm:$0xff] }
  0x18   :  { %298 = vmatpush.bf16.msra.mxu0 %v423_v2  ;;  %441 = vpow2.f32 %v344_v8  ;;  %v428_v18 = vld [vmem:[#allocation7 + $0x58] sm:$0xff]  ;;  %v419_v24 = vld [vmem:[#allocation7 + $0x10] sm:$0xff]  ;;  %v418_v28 = vld [vmem:[#allocation7 + $0x8] sm:$0xff] }
  0x19   :  { %311 = vmatpush.bf16.msra.mxu1 %v431_v3  ;;  %443 = vpow2.f32 %v348_v9  ;;  %v427_v25 = vld [vmem:[#allocation7 + $0x50] sm:$0xff]  ;;  %v426_v29 = vld [vmem:[#allocation7 + $0x48] sm:$0xff]  ;;  %v417_v38 = vld [vmem:[#allocation7] sm:$0xff] }
  0x1a   :  { %445 = vpow2.f32 %v345_v12  ;;  %v425_v39 = vld [vmem:[#allocation7 + $0x40] sm:$0xff] }
  0x1b   :  { %447 = vpow2.f32 %v349_v13 }
  0x1c   :  { %299 = vmatpush.bf16.msra.mxu0 %v422_v4 }
  0x1d   :  { %312 = vmatpush.bf16.msra.mxu1 %v430_v5 }
  0x1e   :  { %v442_v16 = vpop.eup %441 }
  0x1f   :  { %v444_v19 = vpop.eup %443  ;;  %v68_v20 = vadd.f32 1.0, %v442_v16 }
  0x20   :  { %300 = vmatpush.bf16.msra.mxu0 %v421_v14  ;;  %v446_v21 = vpop.eup %445  ;;  %v121_v22 = vadd.f32 1.0, %v444_v19  ;;  %v109_v19 = vstv %s611_s1 }
  0x21   :  { %313 = vmatpush.bf16.msra.mxu1 %v429_v15  ;;  %v448_v23 = vpop.eup %447  ;;  %449 = vrcp.f32 %v68_v20  ;;  %v69_v26 = vadd.f32 1.0, %v446_v21  ;;  %v79_v30 = vand.u32 2147483647, %v68_v20  ;;  %v81_v31 = vand.u32 2147483648, %v68_v20 }
  0x22   :  { %451 = vrcp.f32 %v121_v22  ;;  %v586_v27 = vadd.f32 1.0, %v448_v23  ;;  %v132_v33 = vand.u32 2147483647, %v121_v22  ;;  %v134_v34 = vand.u32 2147483648, %v121_v22 }
  0x23   :  { %453 = vrcp.f32 %v69_v26  ;;  %vm75_vm0 = vweird.f32 %v68_v20  ;;  %vm128_vm1 = vweird.f32 %v121_v22  ;;  %vm589_vm3 = vcmp.eq.f32.partialorder %v79_v30, 8.507059e+37 }
  0x24   :  { %301 = vmatpush.bf16.msra.mxu0 %v420_v17  ;;  %455 = vrcp.f32 %v586_v27  ;;  %v82_v42 = vor.u32 1.1754944e-38, %v81_v31  ;;  %vm593_vm5 = vcmp.eq.f32.partialorder %v132_v33, 8.507059e+37  ;;  %v135_v46 = vor.u32 1.1754944e-38, %v134_v34 }
  0x25   :  { %314 = vmatpush.bf16.msra.mxu1 %v428_v18  ;;  %vm90_vm6 = vweird.f32 %v69_v26  ;;  %v94_v50 = vand.u32 2147483647, %v69_v26  ;;  %v96_v53 = vand.u32 2147483648, %v69_v26  ;;  %vm143_vm8 = vweird.f32 %v586_v27 }
  0x26   :  { %v149_v58 = vand.u32 2147483648, %v586_v27  ;;  %v147_v61 = vand.u32 2147483647, %v586_v27  ;;  %v162_v23 = vstv %s616_s2 }
  0x27   :  { %v450_v32 = vpop.eup %449  ;;  %vm618_vm12 = vcmp.eq.f32.partialorder %v94_v50, 8.507059e+37  ;;  %v97_v3 = vor.u32 1.1754944e-38, %v96_v53 }
  0x28   :  { %302 = vmatpush.bf16.msra.mxu0 %v419_v24  ;;  %v452_v35 = vpop.eup %451  ;;  %v71_v36 = vmul.f32 %v450_v32, %v68_v20  ;;  %vm76_vm2 = vweird.f32 %v450_v32  ;;  %v150_v8 = vor.u32 1.1754944e-38, %v149_v58  ;;  %vm148_vm15 = vcmp.eq.f32.partialorder %v147_v61, 8.507059e+37 }
  0x29   :  { %315 = vmatpush.bf16.msra.mxu1 %v427_v25  ;;  %v124_v37 = vmul.f32 %v452_v35, %v121_v22  ;;  %v454_v43 = vpop.eup %453  ;;  %vm129_vm4 = vweird.f32 %v452_v35  ;;  %vm598_vm7 = vmor %vm75_vm0, %vm76_vm2 }
  0x2a   :  { %v72_v40 = vsub.f32 1.0, %v71_v36  ;;  %v456_v47 = vpop.eup %455  ;;  %v86_v49 = vmul.f32 %v454_v43, %v69_v26  ;;  %vm606_vm9 = vmor %vm128_vm1, %vm129_vm4  ;;  %vm91_vm10 = vweird.f32 %v454_v43 }
  0x2b   :  { %v125_v44 = vsub.f32 1.0, %v124_v37  ;;  %v139_v54 = vmul.f32 %v456_v47, %v586_v27  ;;  %vm144_vm11 = vweird.f32 %v456_v47  ;;  %vm92_vm13 = vmor %vm90_vm6, %vm91_vm10 }
  0x2c   :  { %303 = vmatpush.bf16.msra.mxu0 %v418_v28  ;;  %v73_v48 = vmul.f32 %v450_v32, %v72_v40  ;;  %v87_v57 = vsub.f32 1.0, %v86_v49  ;;  %vm145_vm14 = vmor %vm143_vm8, %vm144_vm11 }
  0x2d   :  { %316 = vmatpush.bf16.msra.mxu1 %v426_v29  ;;  %v126_v52 = vmul.f32 %v452_v35, %v125_v44  ;;  %v140_v60 = vsub.f32 1.0, %v139_v54 }
  0x2e   :  { %v74_v55 = vadd.f32 %v450_v32, %v73_v48  ;;  %v88_v63 = vmul.f32 %v454_v43, %v87_v57 }
  0x2f   :  { %v127_v59 = vadd.f32 %v452_v35, %v126_v52  ;;  %v141_v4 = vmul.f32 %v456_v47, %v140_v60 }
  0x30   :  { %304 = vmatpush.bf16.msra.mxu0 %v417_v38  ;;  %v78_v62 = vsel %vm598_vm7, %v450_v32, %v74_v55  ;;  %v89_v7 = vadd.f32 %v454_v43, %v88_v63 }
  0x31   :  { %317 = vmatpush.bf16.msra.mxu1 %v425_v39  ;;  %v83_v1 = vsel %vm589_vm3, %v82_v42, %v78_v62  ;;  %v131_v2 = vsel %vm606_vm9, %v452_v35, %v127_v59  ;;  %v142_v10 = vadd.f32 %v456_v47, %v141_v4 }
  0x32   :  { %v346_v5 = vadd.f32 -0.5, %v83_v1  ;;  %v136_v6 = vsel %vm593_vm5, %v135_v46, %v131_v2  ;;  %v93_v12 = vsel %vm92_vm13, %v454_v43, %v89_v7 }
  0x33   :  { %v350_v9 = vadd.f32 -0.5, %v136_v6  ;;  %v98_v14 = vsel %vm618_vm12, %v97_v3, %v93_v12  ;;  %v146_v15 = vsel %vm145_vm14, %v456_v47, %v142_v10 }
  0x34   :  { %v102_v11 = vmul.f32 50.0, %v346_v5  ;;  %v347_v17 = vadd.f32 -0.5, %v98_v14  ;;  %v151_v18 = vsel %vm148_vm15, %v150_v8, %v146_v15 }
  0x35   :  { %v155_v13 = vmul.f32 50.0, %v350_v9  ;;  %v351_v21 = vadd.f32 -0.5, %v151_v18 }
  0x36   :  { %v104_v16 = vmax.f32 %v102_v11, 0.0  ;;  %v103_v24 = vmul.f32 50.0, %v347_v17 }
  0x37   :  { %v157_v20 = vmax.f32 %v155_v13, 0.0  ;;  %v156_v26 = vmul.f32 50.0, %v351_v21 }
  0x38   :  { %v106_v22 = vmin.f32 %v104_v16, 1.0  ;;  %v105_v28 = vmax.f32 %v103_v24, 0.0 }
  0x39   :  { %v159_v25 = vmin.f32 %v157_v20, 1.0  ;;  %v158_v30 = vmax.f32 %v156_v26, 0.0 }
  0x3a   :  { %v110_v27 = vmul.f32 %v109_v19, %v106_v22  ;;  %v107_v31 = vmin.f32 %v105_v28, 1.0 }
  0x3b   :  { %v163_v29 = vmul.f32 %v162_v23, %v159_v25  ;;  %v160_v33 = vmin.f32 %v158_v30, 1.0 }
  0x3c   :  { %v111_v34 = vmul.f32 %v109_v19, %v107_v31 }
  0x3d   :  { %v165_v32 = vadd.f32 %v163_v29, %v110_v27  ;;  %v164_v36 = vmul.f32 %v162_v23, %v160_v33 }
  0x3f   :  { %v167_v35 = vpack.c.bf16 %v165_v32, %v165_v32  ;;  %v166_v37 = vadd.f32 %v164_v36, %v111_v34 }
  0x41   :  { %305 = vmatmul.bf16.vlgmr.msra.gmra.mxu0 %v167_v35  ;;  %v168_v38 = vpack.c.bf16 %v166_v37, %v166_v37 }
  0x43   :  { %318 = vmatmul.bf16.vlgmr.msra.gmra.mxu1 %v168_v38 }
  0xbe   :  { %v306_v39 = vpop.f32.mrf.mxu0 }
  0xc0   :  { %v319_v40 = vpop.f32.mrf.mxu1 }
  0xc1   :  { %v320_v41 = vadd.f32 %v319_v40, %v306_v39 }
  0xc3   :  { %v323_v42 = vmul.f32 0.0625, %v320_v41 }
  0xc5   :  { %324 = vst [vmem:[#allocation9] sm:$0xff] %v323_v42 }
  0xc6   :  { %v308_v43 = vpop.f32.mrf.mxu0  ;;  %335 = dma.vmem_to_hbm [thread:$0]  %s331_s30, 128, %s333_s6, [#allocation4]  }
  0xc8   :  { %v321_v44 = vpop.f32.mrf.mxu1 }
  0xc9   :  { %547 = dma.done.wait [#allocation4], 128  }
  0xca   :  { %548 = vsyncadd [#allocation4], 4294967168 }
  0xcb   :  { %340 = vsyncpa [#allocation3], 1 }
  0xcc   :  { %341 = vsyncpa [#allocation8], 1 }
  0xcd   :  { %342 = vsyncpa [#allocation4], 1 }
  0xce   :  { %343 = vsyncpa [#allocation5], 1 }

</bundles_post_ra>
